<compile_context>
chip_gen: v6e
topology: v6e:2x2x1
jax: 0.10.0
libtpu: 0.0.40
codegen_flags: <defaults>
</compile_context>

<pallas_src>
import jax
import jax.numpy as jnp
from jax.experimental import pallas as pl
from jax.experimental.pallas import tpu as pltpu

_LANES = 128
_TARGET_BLOCK_BYTES = 2 * 1024 * 1024  # per input buffer (double-buffered by Pallas)


def _round_up(x: int, m: int) -> int:
    return ((x + m - 1) // m) * m


def _make_kernel(rows: int, block_rows: int, steps_per_split: int, needs_mask: bool):
    def kernel(fake_ref, real_ref, out_ref, acc_ref):
        i = pl.program_id(1)

        # Zero the per-split lane accumulator on the first step of the stream.
        @pl.when(i == 0)
        def _():
            acc_ref[...] = jnp.zeros_like(acc_ref)

        diff = jnp.abs(fake_ref[...].astype(jnp.float32)
                       - real_ref[...].astype(jnp.float32))

        if needs_mask:
            # True (unclamped) block index for this step; rows beyond the valid
            # range (ragged last block / duplicated clamped block) contribute 0.
            gidx = pl.program_id(0) * steps_per_split + i
            row0 = gidx * block_rows
            row_ids = row0 + jax.lax.broadcasted_iota(
                jnp.int32, (block_rows, _LANES), 0)
            diff = jnp.where(row_ids < rows, diff, 0.0)

        # Lane-resident accumulation: reduce sublanes only, lanes stay vector.
        acc_ref[...] += jnp.sum(diff, axis=0, keepdims=True)

        # Emit this split's per-lane partial sums once, on the last step.
        @pl.when(i == pl.num_programs(1) - 1)
        def _():
            out_ref[...] = acc_ref[...]

    return kernel


def wasserstein_loss(fake_im: jax.Array, real_im: jax.Array) -> jax.Array:
    assert fake_im.shape == real_im.shape
    n_elems = fake_im.size

    flat_f = fake_im.reshape(-1)
    flat_r = real_im.reshape(-1)

    # Only pad the sub-lane tail (rare; < 128 elems).  Zero pad contributes
    # |0 - 0| = 0 to the sum, so the divide by the true n_elems stays exact.
    lane_pad = (-n_elems) % _LANES
    if lane_pad:
        flat_f = jnp.pad(flat_f, (0, lane_pad))
        flat_r = jnp.pad(flat_r, (0, lane_pad))

    rows = flat_f.size // _LANES
    f2d = flat_f.reshape(rows, _LANES)
    r2d = flat_r.reshape(rows, _LANES)

    itemsize = f2d.dtype.itemsize
    max_block_rows = max(8, (_TARGET_BLOCK_BYTES // (_LANES * itemsize)) // 8 * 8)
    block_rows = min(max_block_rows, _round_up(rows, 8))

    total_steps = pl.cdiv(rows, block_rows)
    num_splits = 2 if total_steps >= 2 else 1     # 2 TCs on v7x; harmless elsewhere
    steps_per_split = pl.cdiv(total_steps, num_splits)

    needs_mask = (rows % block_rows != 0) or (num_splits * steps_per_split != total_steps)

    last_block = total_steps - 1

    def in_map(s, i):
        # Clamp so the DMA never starts past the array; the duplicated block
        # (only when total_steps is odd) is fully masked out in-kernel.
        return (jnp.minimum(s * steps_per_split + i, last_block), 0)

    kernel = _make_kernel(rows, block_rows, steps_per_split, needs_mask)

    partial = pl.pallas_call(
        kernel,
        out_shape=jax.ShapeDtypeStruct((num_splits, _LANES), jnp.float32),
        grid_spec=pltpu.PrefetchScalarGridSpec(
            num_scalar_prefetch=0,
            grid=(num_splits, steps_per_split),
            in_specs=[
                pl.BlockSpec((block_rows, _LANES), in_map),
                pl.BlockSpec((block_rows, _LANES), in_map),
            ],
            out_specs=pl.BlockSpec((1, _LANES), lambda s, i: (s, 0)),
            scratch_shapes=[pltpu.VMEM((1, _LANES), jnp.float32)],
        ),
        compiler_params=pltpu.CompilerParams(
            dimension_semantics=("parallel", "arbitrary")),
        cost_estimate=pl.CostEstimate(
            flops=3 * n_elems,
            transcendentals=0,
            bytes_accessed=2 * n_elems * itemsize),
    )(f2d, r2d)

    # Final cross-lane/split reduce + mean normalization are trivial in XLA.
    return jnp.sum(partial) / jnp.float32(n_elems)


if __name__ == "__main__":
    key = jax.random.PRNGKey(0)
    k1, k2 = jax.random.split(key)
    fake = jax.random.normal(k1, (2, 4, 16, 16), dtype=jnp.float32)
    real = jax.random.normal(k2, (2, 4, 16, 16), dtype=jnp.float32)

    loss = wasserstein_loss(fake, real)
    jax.block_until_ready(loss)

    ref = jnp.mean(jnp.abs(fake - real))
    assert jnp.allclose(loss, ref, rtol=1e-5, atol=1e-6), (loss, ref)
    print("KERNEL_OK")
</pallas_src>

<mosaic_0001>
module attributes {stable_mosaic.version = 11 : i64} {
  func.func @kernel(%arg0: i32, %arg1: i32, %arg2: memref<16x128xf32, #tpu.memory_space<vmem>>, %arg3: memref<16x128xf32, #tpu.memory_space<vmem>>, %arg4: memref<1x128xf32, #tpu.memory_space<vmem>>, %arg5: memref<1x128xf32, #tpu.memory_space<vmem>>) attributes {dimension_semantics = [#tpu.dimension_semantics<parallel>, #tpu.dimension_semantics<arbitrary>], iteration_bounds = array<i64: 1, 1>, scalar_prefetch = 0 : i64, scratch_operands = 1 : i64, tpu.core_type = #tpu.core_type<tc>, window_params = [{transform_indices = @transform_0, window_bounds = array<i64: 16, 128>}, {transform_indices = @transform_1, window_bounds = array<i64: 16, 128>}, {transform_indices = @transform_2, window_bounds = array<i64: 1, 128>}]} {
    %c0_i32 = arith.constant 0 : i32
    %0 = arith.cmpi eq, %arg1, %c0_i32 : i32
    %1 = arith.extui %0 : i1 to i32
    %c0_i32_0 = arith.constant 0 : i32
    %2 = arith.cmpi ne, %1, %c0_i32_0 : i32
    scf.if %2 {
      %cst_10 = arith.constant 0.000000e+00 : f32
      %15 = vector.broadcast %cst_10 : f32 to vector<1x128xf32>
      %c0_11 = arith.constant 0 : index
      %c0_12 = arith.constant 0 : index
      %16 = vector.load %arg5[%c0_11, %c0_12] : memref<1x128xf32, #tpu.memory_space<vmem>>, vector<1x128xf32>
      tpu.vector_store %arg5[%c0_11, %c0_12], %15 {strides = array<i32>} : memref<1x128xf32, #tpu.memory_space<vmem>>, vector<1x128xf32>,
    } else {
    }
    %c0 = arith.constant 0 : index
    %c0_1 = arith.constant 0 : index
    %3 = vector.load %arg2[%c0, %c0_1] : memref<16x128xf32, #tpu.memory_space<vmem>>, vector<16x128xf32>
    %c0_2 = arith.constant 0 : index
    %c0_3 = arith.constant 0 : index
    %4 = vector.load %arg3[%c0_2, %c0_3] : memref<16x128xf32, #tpu.memory_space<vmem>>, vector<16x128xf32>
    %5 = arith.subf %3, %4 : vector<16x128xf32>
    %6 = math.absf %5 : vector<16x128xf32>
    %c0_4 = arith.constant 0 : index
    %c0_5 = arith.constant 0 : index
    %7 = vector.load %arg5[%c0_4, %c0_5] : memref<1x128xf32, #tpu.memory_space<vmem>>, vector<1x128xf32>
    %cst = arith.constant dense<0.000000e+00> : vector<128xf32>
    %8 = vector.multi_reduction <add>, %6, %cst [0] : vector<16x128xf32> to vector<128xf32>
    %9 = vector.shape_cast %8 : vector<128xf32> to vector<1x128xf32>
    %10 = arith.addf %7, %9 : vector<1x128xf32>
    %c0_6 = arith.constant 0 : index
    %c0_7 = arith.constant 0 : index
    %11 = vector.load %arg5[%c0_6, %c0_7] : memref<1x128xf32, #tpu.memory_space<vmem>>, vector<1x128xf32>
    tpu.vector_store %arg5[%c0_6, %c0_7], %10 {strides = array<i32>} : memref<1x128xf32, #tpu.memory_space<vmem>>, vector<1x128xf32>,
    %c0_i32_8 = arith.constant 0 : i32
    %12 = arith.cmpi eq, %arg1, %c0_i32_8 : i32
    %13 = arith.extui %12 : i1 to i32
    %c0_i32_9 = arith.constant 0 : i32
    %14 = arith.cmpi ne, %13, %c0_i32_9 : i32
    scf.if %14 {
      %c0_10 = arith.constant 0 : index
      %c0_11 = arith.constant 0 : index
      %15 = vector.load %arg5[%c0_10, %c0_11] : memref<1x128xf32, #tpu.memory_space<vmem>>, vector<1x128xf32>
      %c0_12 = arith.constant 0 : index
      %c0_13 = arith.constant 0 : index
      %16 = vector.load %arg4[%c0_12, %c0_13] : memref<1x128xf32, #tpu.memory_space<vmem>>, vector<1x128xf32>
      tpu.vector_store %arg4[%c0_12, %c0_13], %15 {strides = array<i32>} : memref<1x128xf32, #tpu.memory_space<vmem>>, vector<1x128xf32>,
    } else {
    }
    return
  }
  func.func @transform_0(%arg0: i32, %arg1: i32) -> (i32, i32) {
    %c1_i32 = arith.constant 1 : i32
    %0 = arith.muli %arg0, %c1_i32 : i32
    %1 = arith.addi %0, %arg1 : i32
    %c0_i32 = arith.constant 0 : i32
    %2 = arith.minsi %1, %c0_i32 : i32
    %c0_i32_0 = arith.constant 0 : i32
    %c0_i32_1 = arith.constant 0 : i32
    return %2, %c0_i32_0 : i32, i32
  }
  func.func @transform_1(%arg0: i32, %arg1: i32) -> (i32, i32) {
    %c1_i32 = arith.constant 1 : i32
    %0 = arith.muli %arg0, %c1_i32 : i32
    %1 = arith.addi %0, %arg1 : i32
    %c0_i32 = arith.constant 0 : i32
    %2 = arith.minsi %1, %c0_i32 : i32
    %c0_i32_0 = arith.constant 0 : i32
    %c0_i32_1 = arith.constant 0 : i32
    return %2, %c0_i32_0 : i32, i32
  }
  func.func @transform_2(%arg0: i32, %arg1: i32) -> (i32, i32) {
    %c0_i32 = arith.constant 0 : i32
    %c0_i32_0 = arith.constant 0 : i32
    return %arg0, %c0_i32 : i32, i32
  }
}

</mosaic_0001>

<bundles_post_ra>
// kernel: tpu_custom_call.1
= control target key start
LH: loop header
LB: loop body
LE: loop exit
PB: predicated region body
PF: predicated region fallthrough
CT: control target
= control target key end

     0   :  { %7 = vsyncpa [#allocation4], 0  ;;  %s210_s0 = inlined_call_operand.hbm [shape: f32[16,128], index: 0, kind: input, shape index: {}]   ;;  %s211_s1 = inlined_call_operand.hbm [shape: f32[16,128], index: 1, kind: input, shape index: {}]   ;;  %s212_s2 = inlined_call_operand.hbm [shape: f32[1,128], index: 2, kind: output, shape index: {}]  }
   0x1   :  { %8 = vsyncpa [#allocation7], 0 }
   0x2   :  { %9 = vsyncpa [#allocation5], 0  ;;  %s180_s9 = smov [#allocation3]  }
   0x3   :  { %s21_s10 = sshll.u32 %s180_s9, 4  ;;  %s22_s10 = int_to_ptr.vmem [resolvable:$true] %s21_s10 }
   0x4   :  { %s122_s11 = scalar_lea.vmem %s22_s10, 256  ;;  %p127_p1 = scmp.lt.s32.totalorder %s22_s10, %s22_s10 }
   0x5   :  { %p123_p0 = scmp.ne.s32.totalorder %s22_s10, %s122_s11  ;;  %p128_p2 = scmp.lt.s32.totalorder %s122_s11, %s122_s11 }
   0x7   :  { %p129_p3 = por %p128_p2, %p127_p1 }
   0x9   :  { %p130_p4 = pnand %p129_p3, %p123_p0 }
   0xb   :  { %133 = shalt.err (!%p130_p4)
}
   0xc   :  { %s181_s12 = smov 128   ;;  %s182_s13 = smov 8  }
   0xd   :  { %27 = dma.hbm_to_vmem [thread:$0]  %s210_s0, 256, %s22_s10, [#allocation4], %s181_s12, %s181_s12, %s182_s13  }
   0xe   :  { %s183_s16 = smov [#allocation6]  }
   0xf   :  { %s39_s17 = sshll.u32 %s183_s16, 4  ;;  %s40_s17 = int_to_ptr.vmem [resolvable:$true] %s39_s17 }
  0x10   :  { %s142_s18 = scalar_lea.vmem %s40_s17, 256  ;;  %p147_p6 = scmp.lt.s32.totalorder %s40_s17, %s40_s17 }
  0x11   :  { %p143_p5 = scmp.ne.s32.totalorder %s40_s17, %s142_s18  ;;  %p148_p7 = scmp.lt.s32.totalorder %s142_s18, %s142_s18 }
  0x13   :  { %p149_p8 = por %p148_p7, %p147_p6 }
  0x15   :  { %p150_p9 = pnand %p149_p8, %p143_p5 }
  0x17   :  { %153 = shalt.err (!%p150_p9)
}
  0x18   :  { %45 = dma.hbm_to_vmem [thread:$0]  %s211_s1, 256, %s40_s17, [#allocation7], %s181_s12, %s181_s12, %s182_s13  }
  0x19   :  { %174 = dma.done.wait [#allocation4], 256  }
  0x1a   :  { %175 = vsyncadd [#allocation4], 4294967040 }
  0x1b   :  { %176 = dma.done.wait [#allocation7], 256  }
  0x1c   :  { %177 = vsyncadd [#allocation7], 4294967040  ;;  %v184_v0 = vmov 0.0   ;;  %v65_v1 = vld [vmem:[#allocation3] sm:$0xff]  ;;  %v66_v2 = vld [vmem:[#allocation3 + $0x8] sm:$0xff]  ;;  %s185_s0 = smov [#allocation8]  }
  0x1d   :  { %64 = vst [vmem:[#allocation2] sm:$0x1] %v184_v0  ;;  %v67_v3 = vld [vmem:[#allocation6] sm:$0xff]  ;;  %v68_v4 = vld [vmem:[#allocation6 + $0x8] sm:$0xff]  ;;  %s94_s1 = sshll.u32 %s185_s0, 4  ;;  %s95_s1 = int_to_ptr.vmem [resolvable:$true] %s94_s1 }
  0x1e   :  { %v69_v5 = vsub.f32 %v65_v1, %v67_v3  ;;  %v70_v6 = vsub.f32 %v66_v2, %v68_v4  ;;  %s154_s21 = scalar_lea.vmem %s95_s1, 16  ;;  %s158_s22 = scalar_lea.vmem %s95_s1, 32 }
  0x1f   :  { %p155_p10 = scmp.ne.s32.totalorder %s95_s1, %s154_s21  ;;  %p159_p11 = scmp.lt.s32.totalorder %s95_s1, %s95_s1 }
  0x20   :  { %v71_v7 = vand.u32 2147483647, %v69_v5  ;;  %v72_v8 = vand.u32 2147483647, %v70_v6  ;;  %p160_p12 = scmp.lt.s32.totalorder %s158_s22, %s154_s21 }
  0x22   :  { %v74_v9 = vadd.f32 %v72_v8, %v71_v7  ;;  %p161_p13 = por %p160_p12, %p159_p11 }
  0x24   :  { %v75_v10 = vrot.slane %v74_v9, 4  ;;  %v73_v15 = vld [vmem:[#allocation2] sm:$0x1]  ;;  %p162_p0 = pnand %p161_p13, %p155_p10 }
  0x26   :  { %v76_v11 = vadd.f32 %v75_v10, %v74_v9 }
  0x28   :  { %v77_v12 = vrot.slane %v76_v11, 2 }
  0x2a   :  { %v78_v13 = vadd.f32 %v77_v12, %v76_v11 }
  0x2c   :  { %v79_v14 = vrot.slane %v78_v13, 1 }
  0x2e   :  { %v80_v16 = vadd.f32 %v79_v14, %v78_v13 }
  0x30   :  { %v81_v17 = vadd.f32 %v80_v16, %v73_v15 }
  0x32   :  { %82 = vst [vmem:[#allocation2] sm:$0x1] %v81_v17 }
  0x39   :  { %v86_v18 = vld [vmem:[#allocation2] sm:$0x1] }
  0x3a   :  { %87 = vst [vmem:[#allocation8] sm:$0x1] %v86_v18 }
  0x3b   :  { %165 = shalt.err (!%p162_p0)
}
  0x3c   :  { %97 = dma.vmem_to_hbm [thread:$0]  %s95_s1, 16, %s212_s2, [#allocation5]  }
  0x3d   :  { %178 = dma.done.wait [#allocation5], 16  }
  0x3e   :  { %179 = vsyncadd [#allocation5], 4294967280 }
  0x3f   :  { %101 = vsyncpa [#allocation4], 1 }
  0x40   :  { %102 = vsyncpa [#allocation7], 1 }
  0x41   :  { %103 = vsyncpa [#allocation5], 1 }

</bundles_post_ra>
